<compile_context>
chip_gen: v7x
topology: tpu7x:2x2x1
jax: 0.10.0
libtpu: 0.0.40
codegen_flags: <defaults>
</compile_context>

<pallas_src>
import functools

import jax
import jax.numpy as jnp
from jax import lax
from jax.experimental import pallas as pl
from jax.experimental.pallas import tpu as pltpu


# --------------------------------------------------------------------------- #
# Fused FFN kernel (one batch-block per grid step)
# --------------------------------------------------------------------------- #
def _ffn_kernel(lens_ref, x_ref, w0_ref, b0_ref, w1_ref, b1_ref, g_ref, be_ref,
                o_ref, pad0_ref, pad1_ref, *, kernel_size, b_blk, t, c):
    """Per grid step:
       x_ref   : [b_blk, t, c]  f32
       w0_ref  : [K, c, 4c]     bf16      b0_ref: [1, 4c] f32
       w1_ref  : [K, 4c, c]     bf16      b1_ref: [1, c]  f32
       g_ref/be_ref: [1, c]     f32 (LayerNorm affine)
       pad0_ref: [b_blk, t+2p, c]  f32 scratch (zero time-halo)
       pad1_ref: [b_blk, t+2p, 4c] f32 scratch (zero time-halo)
    """
    pad = (kernel_size - 1) // 2
    c4 = 4 * c
    bt = b_blk * t
    eps = 1e-5

    # ---- mask rebuilt from per-batch lengths held in SMEM -------------------
    first = pl.program_id(0) * b_blk
    b_idx = lax.broadcasted_iota(jnp.int32, (b_blk, t, 1), 0)
    t_idx = lax.broadcasted_iota(jnp.int32, (b_blk, t, 1), 1)
    lens = jnp.zeros((b_blk, t, 1), jnp.int32)
    for i in range(b_blk):                       # b_blk is small & static
        lens = jnp.where(b_idx == i, lens_ref[first + i], lens)
    mask3 = (t_idx < lens).astype(jnp.float32)   # [b_blk, t, 1]

    x = x_ref[...]                               # [b_blk, t, c] f32 (residual)

    # ---- zero the time-halo rows of the conv scratches (every step: safe
    #      under megacore sharding of the "parallel" batch axis) --------------
    if pad > 0:
        z0 = jnp.zeros((b_blk, pad, c), pad0_ref.dtype)
        z1 = jnp.zeros((b_blk, pad, c4), pad1_ref.dtype)
        pad0_ref[:, :pad, :] = z0
        pad0_ref[:, pad + t:, :] = z0
        pad1_ref[:, :pad, :] = z1
        pad1_ref[:, pad + t:, :] = z1

    # ---- conv_0: C -> 4C as K shifted matmuls --------------------------------
    pad0_ref[:, pad:pad + t, :] = x * mask3
    acc0 = jnp.zeros((bt, c4), jnp.float32)
    for k in range(kernel_size):                 # static taps
        xs = pad0_ref[:, k:k + t, :].reshape(bt, c).astype(jnp.bfloat16)
        acc0 = acc0 + jnp.dot(xs, w0_ref[k],
                              preferred_element_type=jnp.float32)
    h = jnp.maximum(acc0 + b0_ref[...], 0.0)     # bias + ReLU (f32)
    # dropout: identity (inference)

    # ---- conv_1: 4C -> C ------------------------------------------------------
    pad1_ref[:, pad:pad + t, :] = h.reshape(b_blk, t, c4) * mask3
    acc1 = jnp.zeros((bt, c), jnp.float32)
    for k in range(kernel_size):
        hs = pad1_ref[:, k:k + t, :].reshape(bt, c4).astype(jnp.bfloat16)
        acc1 = acc1 + jnp.dot(hs, w1_ref[k],
                              preferred_element_type=jnp.float32)
    # dropout: identity (inference)

    # ---- residual + LayerNorm(channel) + mask ---------------------------------
    y = (acc1 + b1_ref[...]).reshape(b_blk, t, c) + x
    mean = jnp.mean(y, axis=-1, keepdims=True)
    var = jnp.mean((y - mean) ** 2, axis=-1, keepdims=True)
    y = (y - mean) * lax.rsqrt(var + eps) * g_ref[...] + be_ref[...]
    o_ref[...] = (y * mask3).astype(o_ref.dtype)


# --------------------------------------------------------------------------- #
# pallas_call wrapper
# --------------------------------------------------------------------------- #
def ffn_forward(x_nct, masks, params, kernel_size, *, b_blk=None):
    """x_nct: [Batch, Channels, Time] (PyTorch layout); masks: [Batch, 1, Time]."""
    assert kernel_size % 2 == 1, "same-padding conv requires odd kernel_size"
    B, C, T = x_nct.shape
    C4 = 4 * C
    pad = (kernel_size - 1) // 2

    # TODO(synk): only prefix (length) masks are supported in-kernel; arbitrary
    # masks would need to be passed as a lane-dense [B, T] tensor instead.
    lengths = jnp.sum(masks[:, 0, :] > 0, axis=-1).astype(jnp.int32)   # [B]

    # Pack several batch rows per grid step so the MXU M dimension reaches ~256.
    if b_blk is None:
        b_blk = max(1, min(B, pl.cdiv(256, T)))
    Bp = pl.cdiv(B, b_blk) * b_blk

    x = jnp.transpose(x_nct, (0, 2, 1)).astype(jnp.float32)            # [B, T, C]
    if Bp != B:
        x = jnp.pad(x, ((0, Bp - B), (0, 0), (0, 0)))
        lengths = jnp.pad(lengths, (0, Bp - B))

    kernel = functools.partial(_ffn_kernel, kernel_size=kernel_size,
                               b_blk=b_blk, t=T, c=C)

    grid_spec = pltpu.PrefetchScalarGridSpec(
        num_scalar_prefetch=1,                       # lengths -> SMEM
        grid=(Bp // b_blk,),
        in_specs=[
            pl.BlockSpec((b_blk, T, C), lambda b, lens: (b, 0, 0)),         # x
            pl.BlockSpec((kernel_size, C, C4), lambda b, lens: (0, 0, 0)),  # w0 (bf16)
            pl.BlockSpec((1, C4), lambda b, lens: (0, 0)),                  # b0
            pl.BlockSpec((kernel_size, C4, C), lambda b, lens: (0, 0, 0)),  # w1 (bf16)
            pl.BlockSpec((1, C), lambda b, lens: (0, 0)),                   # b1
            pl.BlockSpec((1, C), lambda b, lens: (0, 0)),                   # ln gamma
            pl.BlockSpec((1, C), lambda b, lens: (0, 0)),                   # ln beta
        ],
        out_specs=pl.BlockSpec((b_blk, T, C), lambda b, lens: (b, 0, 0)),
        scratch_shapes=[
            pltpu.VMEM((b_blk, T + 2 * pad, C), jnp.float32),    # conv_0 padded input
            pltpu.VMEM((b_blk, T + 2 * pad, C4), jnp.float32),   # conv_1 padded input
        ],
    )

    out = pl.pallas_call(
        kernel,
        out_shape=jax.ShapeDtypeStruct((Bp, T, C), jnp.float32),
        grid_spec=grid_spec,
        compiler_params=pltpu.CompilerParams(
            dimension_semantics=("parallel",)),      # batch steps independent
    )(lengths, x, params["w0"], params["b0"], params["w1"], params["b1"],
      params["ln_g"], params["ln_b"])

    return jnp.transpose(out[:B], (0, 2, 1))                            # [B, C, T]


# --------------------------------------------------------------------------- #
# Parameter init (deterministic, synthetic) + pure-JAX reference
# --------------------------------------------------------------------------- #
def init_params(key, channels, kernel_size):
    C, C4 = channels, channels * 4
    k0, k1, k2, k3 = jax.random.split(key, 4)
    # torch Conv1d weight layout is [Cout, Cin, K]; we store [K, Cin, Cout],
    # bf16 for native MXU throughput and half the weight DMA bytes.
    return {
        "w0": (jax.random.normal(k0, (kernel_size, C, C4), jnp.float32)
               * 0.1).astype(jnp.bfloat16),
        "b0": jax.random.normal(k1, (1, C4), jnp.float32) * 0.02,
        "w1": (jax.random.normal(k2, (kernel_size, C4, C), jnp.float32)
               * 0.1).astype(jnp.bfloat16),
        "b1": jax.random.normal(k3, (1, C), jnp.float32) * 0.02,
        "ln_g": jnp.ones((1, C), jnp.float32),
        "ln_b": jnp.zeros((1, C), jnp.float32),
    }


def ffn_reference(x_nct, masks, params, kernel_size):
    """Straight-line JAX (f32) mirror of the PyTorch forward, for validation."""
    B, C, T = x_nct.shape
    pad = (kernel_size - 1) // 2
    x = jnp.transpose(x_nct, (0, 2, 1)).astype(jnp.float32)   # [B, T, C]
    m = jnp.transpose(masks, (0, 2, 1)).astype(jnp.float32)   # [B, T, 1]
    w0 = params["w0"].astype(jnp.float32)
    w1 = params["w1"].astype(jnp.float32)

    def conv(z, w, b):
        zp = jnp.pad(z, ((0, 0), (pad, pad), (0, 0)))
        out = sum(jnp.einsum("btc,cd->btd", zp[:, k:k + T, :], w[k])
                  for k in range(kernel_size))
        return out + b

    h = jnp.maximum(conv(x * m, w0, params["b0"]), 0.0)       # relu; dropout=id
    y = conv(h * m, w1, params["b1"]) + x                     # dropout=id; +res
    mean = jnp.mean(y, -1, keepdims=True)
    var = jnp.mean((y - mean) ** 2, -1, keepdims=True)
    y = (y - mean) / jnp.sqrt(var + 1e-5) * params["ln_g"] + params["ln_b"]
    return jnp.transpose(y * m, (0, 2, 1))


# --------------------------------------------------------------------------- #
if __name__ == "__main__":
    B, C, T = 2, 32, 16          # channels=32 -> hidden 4*C = 128 (lane-dense)
    K = 3

    key = jax.random.PRNGKey(0)
    kx, kp = jax.random.split(key)
    x = jax.random.normal(kx, (B, C, T), jnp.float32)     # [Batch, Dim, Time]
    lengths = jnp.array([16, 11], jnp.int32)
    masks = (jnp.arange(T)[None, None, :] < lengths[:, None, None]
             ).astype(jnp.float32)                        # [B, 1, T]

    params = init_params(kp, C, K)

    out = ffn_forward(x, masks, params, K)
    out = jax.block_until_ready(out)
    assert out.shape == (B, C, T)
    assert bool(jnp.all(jnp.isfinite(out)))

    ref = ffn_reference(x, masks, params, K)
    err = float(jnp.max(jnp.abs(out - ref)))
    assert err < 7.5e-2, f"max abs error vs reference: {err}"
    print("KERNEL_OK")
</pallas_src>

<mosaic_0001>
module attributes {stable_mosaic.version = 11 : i64} {
  func.func @_ffn_kernel(%arg0: i32, %arg1: memref<2xi32, #tpu.memory_space<smem>>, %arg2: memref<2x16x32xf32, #tpu.memory_space<vmem>>, %arg3: memref<3x32x128xbf16, #tpu.memory_space<vmem>>, %arg4: memref<1x128xf32, #tpu.memory_space<vmem>>, %arg5: memref<3x128x32xbf16, #tpu.memory_space<vmem>>, %arg6: memref<1x32xf32, #tpu.memory_space<vmem>>, %arg7: memref<1x32xf32, #tpu.memory_space<vmem>>, %arg8: memref<1x32xf32, #tpu.memory_space<vmem>>, %arg9: memref<2x16x32xf32, #tpu.memory_space<vmem>>, %arg10: memref<2x18x32xf32, #tpu.memory_space<vmem>>, %arg11: memref<2x18x128xf32, #tpu.memory_space<vmem>>) attributes {dimension_semantics = [#tpu.dimension_semantics<parallel>], iteration_bounds = array<i64: 1>, scalar_prefetch = 1 : i64, scratch_operands = 2 : i64, tpu.core_type = #tpu.core_type<tc>, window_params = [{transform_indices = @transform_0, window_bounds = array<i64: 2, 16, 32>}, {pipeline_mode = #tpu.pipeline_mode<synchronous>, transform_indices = @transform_1, window_bounds = array<i64: 3, 32, 128>}, {pipeline_mode = #tpu.pipeline_mode<synchronous>, transform_indices = @transform_2, window_bounds = array<i64: 1, 128>}, {pipeline_mode = #tpu.pipeline_mode<synchronous>, transform_indices = @transform_3, window_bounds = array<i64: 3, 128, 32>}, {pipeline_mode = #tpu.pipeline_mode<synchronous>, transform_indices = @transform_4, window_bounds = array<i64: 1, 32>}, {pipeline_mode = #tpu.pipeline_mode<synchronous>, transform_indices = @transform_5, window_bounds = array<i64: 1, 32>}, {pipeline_mode = #tpu.pipeline_mode<synchronous>, transform_indices = @transform_6, window_bounds = array<i64: 1, 32>}, {transform_indices = @transform_7, window_bounds = array<i64: 2, 16, 32>}]} {
    %c2_i32 = arith.constant 2 : i32
    %0 = arith.muli %arg0, %c2_i32 : i32
    %1 = tpu.iota {dimensions = array<i32: 0>} : vector<2x16x1xi32>
    %2 = tpu.iota {dimensions = array<i32: 1>} : vector<2x16x1xi32>
    %c0_i32 = arith.constant 0 : i32
    %3 = vector.broadcast %c0_i32 : i32 to vector<2x16x1xi32>
    %c0_i32_0 = arith.constant 0 : i32
    %4 = vector.broadcast %c0_i32_0 : i32 to vector<2x16x1xi32>
    %5 = arith.cmpi eq, %1, %4 : vector<2x16x1xi32>
    %c0_i32_1 = arith.constant 0 : i32
    %6 = arith.addi %0, %c0_i32_1 : i32
    %7 = arith.index_cast %6 : i32 to index
    %8 = memref.load %arg1[%7] : memref<2xi32, #tpu.memory_space<smem>>
    %9 = vector.broadcast %8 : i32 to vector<2x16x1xi32>
    %10 = arith.select %5, %9, %3 : vector<2x16x1xi1>, vector<2x16x1xi32>
    %c1_i32 = arith.constant 1 : i32
    %11 = vector.broadcast %c1_i32 : i32 to vector<2x16x1xi32>
    %12 = arith.cmpi eq, %1, %11 : vector<2x16x1xi32>
    %c1_i32_2 = arith.constant 1 : i32
    %13 = arith.addi %0, %c1_i32_2 : i32
    %14 = arith.index_cast %13 : i32 to index
    %15 = memref.load %arg1[%14] : memref<2xi32, #tpu.memory_space<smem>>
    %16 = vector.broadcast %15 : i32 to vector<2x16x1xi32>
    %17 = arith.select %12, %16, %10 : vector<2x16x1xi1>, vector<2x16x1xi32>
    %18 = arith.cmpi slt, %2, %17 : vector<2x16x1xi32>
    %19 = arith.extui %18 : vector<2x16x1xi1> to vector<2x16x1xi32>
    %20 = arith.sitofp %19 : vector<2x16x1xi32> to vector<2x16x1xf32>
    %c0 = arith.constant 0 : index
    %c0_3 = arith.constant 0 : index
    %c0_4 = arith.constant 0 : index
    %21 = vector.load %arg2[%c0, %c0_3, %c0_4] : memref<2x16x32xf32, #tpu.memory_space<vmem>>, vector<2x16x32xf32>
    %cst = arith.constant 0.000000e+00 : f32
    %22 = vector.broadcast %cst : f32 to vector<2x1x32xf32>
    %cst_5 = arith.constant 0.000000e+00 : f32
    %23 = vector.broadcast %cst_5 : f32 to vector<2x1x128xf32>
    %c0_6 = arith.constant 0 : index
    %c0_7 = arith.constant 0 : index
    %c0_8 = arith.constant 0 : index
    %24 = vector.load %arg10[%c0_6, %c0_7, %c0_8] : memref<2x18x32xf32, #tpu.memory_space<vmem>>, vector<2x1x32xf32>
    tpu.vector_store %arg10[%c0_6, %c0_7, %c0_8], %22 {strides = array<i32>} : memref<2x18x32xf32, #tpu.memory_space<vmem>>, vector<2x1x32xf32>,
    %c0_9 = arith.constant 0 : index
    %c17 = arith.constant 17 : index
    %c0_10 = arith.constant 0 : index
    %25 = vector.load %arg10[%c0_9, %c17, %c0_10] : memref<2x18x32xf32, #tpu.memory_space<vmem>>, vector<2x1x32xf32>
    tpu.vector_store %arg10[%c0_9, %c17, %c0_10], %22 {strides = array<i32>} : memref<2x18x32xf32, #tpu.memory_space<vmem>>, vector<2x1x32xf32>,
    %c0_11 = arith.constant 0 : index
    %c0_12 = arith.constant 0 : index
    %c0_13 = arith.constant 0 : index
    %26 = vector.load %arg11[%c0_11, %c0_12, %c0_13] : memref<2x18x128xf32, #tpu.memory_space<vmem>>, vector<2x1x128xf32>
    tpu.vector_store %arg11[%c0_11, %c0_12, %c0_13], %23 {strides = array<i32>} : memref<2x18x128xf32, #tpu.memory_space<vmem>>, vector<2x1x128xf32>,
    %c0_14 = arith.constant 0 : index
    %c17_15 = arith.constant 17 : index
    %c0_16 = arith.constant 0 : index
    %27 = vector.load %arg11[%c0_14, %c17_15, %c0_16] : memref<2x18x128xf32, #tpu.memory_space<vmem>>, vector<2x1x128xf32>
    tpu.vector_store %arg11[%c0_14, %c17_15, %c0_16], %23 {strides = array<i32>} : memref<2x18x128xf32, #tpu.memory_space<vmem>>, vector<2x1x128xf32>,
    %28 = vector.broadcast %20 : vector<2x16x1xf32> to vector<2x16x32xf32>
    %29 = arith.mulf %21, %28 : vector<2x16x32xf32>
    %c0_17 = arith.constant 0 : index
    %c1 = arith.constant 1 : index
    %c0_18 = arith.constant 0 : index
    %30 = vector.load %arg10[%c0_17, %c1, %c0_18] : memref<2x18x32xf32, #tpu.memory_space<vmem>>, vector<2x16x32xf32>
    tpu.vector_store %arg10[%c0_17, %c1, %c0_18], %29 {strides = array<i32>} : memref<2x18x32xf32, #tpu.memory_space<vmem>>, vector<2x16x32xf32>,
    %cst_19 = arith.constant 0.000000e+00 : f32
    %31 = vector.broadcast %cst_19 : f32 to vector<32x128xf32>
    %c0_20 = arith.constant 0 : index
    %c0_21 = arith.constant 0 : index
    %c0_22 = arith.constant 0 : index
    %32 = vector.load %arg10[%c0_20, %c0_21, %c0_22] : memref<2x18x32xf32, #tpu.memory_space<vmem>>, vector<2x16x32xf32>
    %33 = vector.shape_cast %32 : vector<2x16x32xf32> to vector<32x32xf32>
    %34 = arith.truncf %33 : vector<32x32xf32> to vector<32x32xbf16>
    %c0_23 = arith.constant 0 : index
    %c0_24 = arith.constant 0 : index
    %c0_25 = arith.constant 0 : index
    %35 = vector.load %arg3[%c0_23, %c0_24, %c0_25] : memref<3x32x128xbf16, #tpu.memory_space<vmem>>, vector<1x32x128xbf16>
    %36 = vector.shape_cast %35 : vector<1x32x128xbf16> to vector<32x128xbf16>
    %cst_26 = arith.constant dense<0.000000e+00> : vector<32x128xf32>
    %37 = tpu.matmul %34, %36, %cst_26 {dimension_numbers = #tpu.dot_dimension_numbers<[1], [0], [0], [1], [0, 0, 1, 1], [], []>} : vector<32x32xbf16>, vector<32x128xbf16>, vector<32x128xf32> -> vector<32x128xf32>
    %38 = arith.addf %31, %37 : vector<32x128xf32>
    %c0_27 = arith.constant 0 : index
    %c1_28 = arith.constant 1 : index
    %c0_29 = arith.constant 0 : index
    %39 = vector.load %arg10[%c0_27, %c1_28, %c0_29] : memref<2x18x32xf32, #tpu.memory_space<vmem>>, vector<2x16x32xf32>
    %40 = vector.shape_cast %39 : vector<2x16x32xf32> to vector<32x32xf32>
    %41 = arith.truncf %40 : vector<32x32xf32> to vector<32x32xbf16>
    %c1_30 = arith.constant 1 : index
    %c0_31 = arith.constant 0 : index
    %c0_32 = arith.constant 0 : index
    %42 = vector.load %arg3[%c1_30, %c0_31, %c0_32] : memref<3x32x128xbf16, #tpu.memory_space<vmem>>, vector<1x32x128xbf16>
    %43 = vector.shape_cast %42 : vector<1x32x128xbf16> to vector<32x128xbf16>
    %cst_33 = arith.constant dense<0.000000e+00> : vector<32x128xf32>
    %44 = tpu.matmul %41, %43, %cst_33 {dimension_numbers = #tpu.dot_dimension_numbers<[1], [0], [0], [1], [0, 0, 1, 1], [], []>} : vector<32x32xbf16>, vector<32x128xbf16>, vector<32x128xf32> -> vector<32x128xf32>
    %45 = arith.addf %38, %44 : vector<32x128xf32>
    %c0_34 = arith.constant 0 : index
    %c2 = arith.constant 2 : index
    %c0_35 = arith.constant 0 : index
    %46 = vector.load %arg10[%c0_34, %c2, %c0_35] : memref<2x18x32xf32, #tpu.memory_space<vmem>>, vector<2x16x32xf32>
    %47 = vector.shape_cast %46 : vector<2x16x32xf32> to vector<32x32xf32>
    %48 = arith.truncf %47 : vector<32x32xf32> to vector<32x32xbf16>
    %c2_36 = arith.constant 2 : index
    %c0_37 = arith.constant 0 : index
    %c0_38 = arith.constant 0 : index
    %49 = vector.load %arg3[%c2_36, %c0_37, %c0_38] : memref<3x32x128xbf16, #tpu.memory_space<vmem>>, vector<1x32x128xbf16>
    %50 = vector.shape_cast %49 : vector<1x32x128xbf16> to vector<32x128xbf16>
    %cst_39 = arith.constant dense<0.000000e+00> : vector<32x128xf32>
    %51 = tpu.matmul %48, %50, %cst_39 {dimension_numbers = #tpu.dot_dimension_numbers<[1], [0], [0], [1], [0, 0, 1, 1], [], []>} : vector<32x32xbf16>, vector<32x128xbf16>, vector<32x128xf32> -> vector<32x128xf32>
    %52 = arith.addf %45, %51 : vector<32x128xf32>
    %c0_40 = arith.constant 0 : index
    %c0_41 = arith.constant 0 : index
    %53 = vector.load %arg4[%c0_40, %c0_41] : memref<1x128xf32, #tpu.memory_space<vmem>>, vector<1x128xf32>
    %54 = vector.broadcast %53 : vector<1x128xf32> to vector<32x128xf32>
    %55 = arith.addf %52, %54 : vector<32x128xf32>
    %cst_42 = arith.constant 0.000000e+00 : f32
    %56 = vector.broadcast %cst_42 : f32 to vector<32x128xf32>
    %57 = arith.maximumf %55, %56 : vector<32x128xf32>
    %58 = vector.shape_cast %57 : vector<32x128xf32> to vector<2x16x128xf32>
    %59 = vector.broadcast %20 : vector<2x16x1xf32> to vector<2x16x128xf32>
    %60 = arith.mulf %58, %59 : vector<2x16x128xf32>
    %c0_43 = arith.constant 0 : index
    %c1_44 = arith.constant 1 : index
    %c0_45 = arith.constant 0 : index
    %61 = vector.load %arg11[%c0_43, %c1_44, %c0_45] : memref<2x18x128xf32, #tpu.memory_space<vmem>>, vector<2x16x128xf32>
    tpu.vector_store %arg11[%c0_43, %c1_44, %c0_45], %60 {strides = array<i32>} : memref<2x18x128xf32, #tpu.memory_space<vmem>>, vector<2x16x128xf32>,
    %cst_46 = arith.constant 0.000000e+00 : f32
    %62 = vector.broadcast %cst_46 : f32 to vector<32x32xf32>
    %c0_47 = arith.constant 0 : index
    %c0_48 = arith.constant 0 : index
    %c0_49 = arith.constant 0 : index
    %63 = vector.load %arg11[%c0_47, %c0_48, %c0_49] : memref<2x18x128xf32, #tpu.memory_space<vmem>>, vector<2x16x128xf32>
    %64 = vector.shape_cast %63 : vector<2x16x128xf32> to vector<32x128xf32>
    %65 = arith.truncf %64 : vector<32x128xf32> to vector<32x128xbf16>
    %c0_50 = arith.constant 0 : index
    %c0_51 = arith.constant 0 : index
    %c0_52 = arith.constant 0 : index
    %66 = vector.load %arg5[%c0_50, %c0_51, %c0_52] : memref<3x128x32xbf16, #tpu.memory_space<vmem>>, vector<1x128x32xbf16>
    %67 = vector.shape_cast %66 : vector<1x128x32xbf16> to vector<128x32xbf16>
    %cst_53 = arith.constant dense<0.000000e+00> : vector<32x32xf32>
    %68 = tpu.matmul %65, %67, %cst_53 {dimension_numbers = #tpu.dot_dimension_numbers<[1], [0], [0], [1], [0, 0, 1, 1], [], []>} : vector<32x128xbf16>, vector<128x32xbf16>, vector<32x32xf32> -> vector<32x32xf32>
    %69 = arith.addf %62, %68 : vector<32x32xf32>
    %c0_54 = arith.constant 0 : index
    %c1_55 = arith.constant 1 : index
    %c0_56 = arith.constant 0 : index
    %70 = vector.load %arg11[%c0_54, %c1_55, %c0_56] : memref<2x18x128xf32, #tpu.memory_space<vmem>>, vector<2x16x128xf32>
    %71 = vector.shape_cast %70 : vector<2x16x128xf32> to vector<32x128xf32>
    %72 = arith.truncf %71 : vector<32x128xf32> to vector<32x128xbf16>
    %c1_57 = arith.constant 1 : index
    %c0_58 = arith.constant 0 : index
    %c0_59 = arith.constant 0 : index
    %73 = vector.load %arg5[%c1_57, %c0_58, %c0_59] : memref<3x128x32xbf16, #tpu.memory_space<vmem>>, vector<1x128x32xbf16>
    %74 = vector.shape_cast %73 : vector<1x128x32xbf16> to vector<128x32xbf16>
    %cst_60 = arith.constant dense<0.000000e+00> : vector<32x32xf32>
    %75 = tpu.matmul %72, %74, %cst_60 {dimension_numbers = #tpu.dot_dimension_numbers<[1], [0], [0], [1], [0, 0, 1, 1], [], []>} : vector<32x128xbf16>, vector<128x32xbf16>, vector<32x32xf32> -> vector<32x32xf32>
    %76 = arith.addf %69, %75 : vector<32x32xf32>
    %c0_61 = arith.constant 0 : index
    %c2_62 = arith.constant 2 : index
    %c0_63 = arith.constant 0 : index
    %77 = vector.load %arg11[%c0_61, %c2_62, %c0_63] : memref<2x18x128xf32, #tpu.memory_space<vmem>>, vector<2x16x128xf32>
    %78 = vector.shape_cast %77 : vector<2x16x128xf32> to vector<32x128xf32>
    %79 = arith.truncf %78 : vector<32x128xf32> to vector<32x128xbf16>
    %c2_64 = arith.constant 2 : index
    %c0_65 = arith.constant 0 : index
    %c0_66 = arith.constant 0 : index
    %80 = vector.load %arg5[%c2_64, %c0_65, %c0_66] : memref<3x128x32xbf16, #tpu.memory_space<vmem>>, vector<1x128x32xbf16>
    %81 = vector.shape_cast %80 : vector<1x128x32xbf16> to vector<128x32xbf16>
    %cst_67 = arith.constant dense<0.000000e+00> : vector<32x32xf32>
    %82 = tpu.matmul %79, %81, %cst_67 {dimension_numbers = #tpu.dot_dimension_numbers<[1], [0], [0], [1], [0, 0, 1, 1], [], []>} : vector<32x128xbf16>, vector<128x32xbf16>, vector<32x32xf32> -> vector<32x32xf32>
    %83 = arith.addf %76, %82 : vector<32x32xf32>
    %c0_68 = arith.constant 0 : index
    %c0_69 = arith.constant 0 : index
    %84 = vector.load %arg6[%c0_68, %c0_69] : memref<1x32xf32, #tpu.memory_space<vmem>>, vector<1x32xf32>
    %85 = vector.broadcast %84 : vector<1x32xf32> to vector<32x32xf32>
    %86 = arith.addf %83, %85 : vector<32x32xf32>
    %87 = vector.shape_cast %86 : vector<32x32xf32> to vector<2x16x32xf32>
    %88 = arith.addf %87, %21 : vector<2x16x32xf32>
    %cst_70 = arith.constant dense<0.000000e+00> : vector<2x16xf32>
    %89 = vector.multi_reduction <add>, %88, %cst_70 [2] : vector<2x16x32xf32> to vector<2x16xf32>
    %90 = vector.shape_cast %89 : vector<2x16xf32> to vector<2x16x1xf32>
    %cst_71 = arith.constant 3.200000e+01 : f32
    %91 = vector.broadcast %cst_71 : f32 to vector<2x16x1xf32>
    %92 = arith.divf %90, %91 : vector<2x16x1xf32>
    %93 = vector.broadcast %92 : vector<2x16x1xf32> to vector<2x16x32xf32>
    %94 = arith.subf %88, %93 : vector<2x16x32xf32>
    %95 = arith.mulf %94, %94 : vector<2x16x32xf32>
    %cst_72 = arith.constant dense<0.000000e+00> : vector<2x16xf32>
    %96 = vector.multi_reduction <add>, %95, %cst_72 [2] : vector<2x16x32xf32> to vector<2x16xf32>
    %97 = vector.shape_cast %96 : vector<2x16xf32> to vector<2x16x1xf32>
    %cst_73 = arith.constant 3.200000e+01 : f32
    %98 = vector.broadcast %cst_73 : f32 to vector<2x16x1xf32>
    %99 = arith.divf %97, %98 : vector<2x16x1xf32>
    %100 = vector.broadcast %92 : vector<2x16x1xf32> to vector<2x16x32xf32>
    %101 = arith.subf %88, %100 : vector<2x16x32xf32>
    %cst_74 = arith.constant 9.99999974E-6 : f32
    %102 = vector.broadcast %cst_74 : f32 to vector<2x16x1xf32>
    %103 = arith.addf %99, %102 : vector<2x16x1xf32>
    %104 = math.rsqrt %103 : vector<2x16x1xf32>
    %105 = vector.broadcast %104 : vector<2x16x1xf32> to vector<2x16x32xf32>
    %106 = arith.mulf %101, %105 : vector<2x16x32xf32>
    %c0_75 = arith.constant 0 : index
    %c0_76 = arith.constant 0 : index
    %107 = vector.load %arg7[%c0_75, %c0_76] : memref<1x32xf32, #tpu.memory_space<vmem>>, vector<1x32xf32>
    %108 = vector.shape_cast %107 : vector<1x32xf32> to vector<1x1x32xf32>
    %109 = vector.broadcast %108 : vector<1x1x32xf32> to vector<2x16x32xf32>
    %110 = arith.mulf %106, %109 : vector<2x16x32xf32>
    %c0_77 = arith.constant 0 : index
    %c0_78 = arith.constant 0 : index
    %111 = vector.load %arg8[%c0_77, %c0_78] : memref<1x32xf32, #tpu.memory_space<vmem>>, vector<1x32xf32>
    %112 = vector.shape_cast %111 : vector<1x32xf32> to vector<1x1x32xf32>
    %113 = vector.broadcast %112 : vector<1x1x32xf32> to vector<2x16x32xf32>
    %114 = arith.addf %110, %113 : vector<2x16x32xf32>
    %115 = vector.broadcast %20 : vector<2x16x1xf32> to vector<2x16x32xf32>
    %116 = arith.mulf %114, %115 : vector<2x16x32xf32>
    %c0_79 = arith.constant 0 : index
    %c0_80 = arith.constant 0 : index
    %c0_81 = arith.constant 0 : index
    %117 = vector.load %arg9[%c0_79, %c0_80, %c0_81] : memref<2x16x32xf32, #tpu.memory_space<vmem>>, vector<2x16x32xf32>
    tpu.vector_store %arg9[%c0_79, %c0_80, %c0_81], %116 {strides = array<i32>} : memref<2x16x32xf32, #tpu.memory_space<vmem>>, vector<2x16x32xf32>,
    return
  }
  func.func @transform_0(%arg0: i32, %arg1: memref<2xi32, #tpu.memory_space<smem>>) -> (i32, i32, i32) {
    %c0_i32 = arith.constant 0 : i32
    %c0_i32_0 = arith.constant 0 : i32
    %c0_i32_1 = arith.constant 0 : i32
    return %arg0, %c0_i32, %c0_i32_0 : i32, i32, i32
  }
  func.func @transform_1(%arg0: i32, %arg1: memref<2xi32, #tpu.memory_space<smem>>) -> (i32, i32, i32) {
    %c0_i32 = arith.constant 0 : i32
    %c0_i32_0 = arith.constant 0 : i32
    %c0_i32_1 = arith.constant 0 : i32
    %c0_i32_2 = arith.constant 0 : i32
    return %c0_i32, %c0_i32_0, %c0_i32_1 : i32, i32, i32
  }
  func.func @transform_2(%arg0: i32, %arg1: memref<2xi32, #tpu.memory_space<smem>>) -> (i32, i32) {
    %c0_i32 = arith.constant 0 : i32
    %c0_i32_0 = arith.constant 0 : i32
    %c0_i32_1 = arith.constant 0 : i32
    return %c0_i32, %c0_i32_0 : i32, i32
  }
  func.func @transform_3(%arg0: i32, %arg1: memref<2xi32, #tpu.memory_space<smem>>) -> (i32, i32, i32) {
    %c0_i32 = arith.constant 0 : i32
    %c0_i32_0 = arith.constant 0 : i32
    %c0_i32_1 = arith.constant 0 : i32
    %c0_i32_2 = arith.constant 0 : i32
    return %c0_i32, %c0_i32_0, %c0_i32_1 : i32, i32, i32
  }
  func.func @transform_4(%arg0: i32, %arg1: memref<2xi32, #tpu.memory_space<smem>>) -> (i32, i32) {
    %c0_i32 = arith.constant 0 : i32
    %c0_i32_0 = arith.constant 0 : i32
    %c0_i32_1 = arith.constant 0 : i32
    return %c0_i32, %c0_i32_0 : i32, i32
  }
  func.func @transform_5(%arg0: i32, %arg1: memref<2xi32, #tpu.memory_space<smem>>) -> (i32, i32) {
    %c0_i32 = arith.constant 0 : i32
    %c0_i32_0 = arith.constant 0 : i32
    %c0_i32_1 = arith.constant 0 : i32
    return %c0_i32, %c0_i32_0 : i32, i32
  }
  func.func @transform_6(%arg0: i32, %arg1: memref<2xi32, #tpu.memory_space<smem>>) -> (i32, i32) {
    %c0_i32 = arith.constant 0 : i32
    %c0_i32_0 = arith.constant 0 : i32
    %c0_i32_1 = arith.constant 0 : i32
    return %c0_i32, %c0_i32_0 : i32, i32
  }
  func.func @transform_7(%arg0: i32, %arg1: memref<2xi32, #tpu.memory_space<smem>>) -> (i32, i32, i32) {
    %c0_i32 = arith.constant 0 : i32
    %c0_i32_0 = arith.constant 0 : i32
    %c0_i32_1 = arith.constant 0 : i32
    return %arg0, %c0_i32, %c0_i32_0 : i32, i32, i32
  }
}

</mosaic_0001>

<bundles_post_ra>
// kernel: tpu_custom_call.1
= control target key start
LH: loop header
LB: loop body
LE: loop exit
PB: predicated region body
PF: predicated region fallthrough
CT: control target
= control target key end

     0   :  { %s1360_s0 = inlined_call_operand.vmem [shape: s32[2], index: 0, kind: input, shape index: {}]   ;;  %s1361_s1 = inlined_call_operand.vmem [shape: f32[2,16,32], index: 1, kind: input, shape index: {}]   ;;  %s1362_s2 = inlined_call_operand.vmem [shape: bf16[3,32,128], index: 2, kind: input, shape index: {}]   ;;  %s1363_s3 = inlined_call_operand.vmem [shape: f32[1,128], index: 3, kind: input, shape index: {}]   ;;  %s1364_s4 = inlined_call_operand.vmem [shape: bf16[3,128,32], index: 4, kind: input, shape index: {}]   ;;  %s1365_s5 = inlined_call_operand.vmem [shape: f32[1,32], index: 5, kind: input, shape index: {}]   ;;  %s1366_s6 = inlined_call_operand.vmem [shape: f32[1,32], index: 6, kind: input, shape index: {}]   ;;  %s1367_s7 = inlined_call_operand.vmem [shape: f32[1,32], index: 7, kind: input, shape index: {}]   ;;  %s1368_s8 = inlined_call_operand.hbm [shape: f32[2,16,32], index: 8, kind: output, shape index: {}]  }
   0x1   :  { %s13_s29 = sshll.u32 %s1360_s0, 4  ;;  %s14_s29 = int_to_ptr.vmem [resolvable:$true] %s13_s29 }
   0x2   :  { %s1085_s30 = scalar_lea.vmem %s14_s29, 16  ;;  %p1090_p1 = scmp.lt.s32.totalorder %s14_s29, %s14_s29 }
   0x3   :  { %p1086_p0 = scmp.ne.s32.totalorder %s14_s29, %s1085_s30  ;;  %p1091_p2 = scmp.lt.s32.totalorder %s1085_s30, %s1085_s30 }
   0x5   :  { %p1092_p3 = por %p1091_p2, %p1090_p1 }
   0x7   :  { %p1093_p4 = pnand %p1092_p3, %p1086_p0 }
   0x9   :  { %1096 = shalt.err (!%p1093_p4)  }
   0xa   :  { %s1123_s9 = smov [#allocation5]  }
   0xb   :  { %16 = dma.vmem_to_smem %s14_s29, 16, %s1123_s9, [#allocation4] }
   0xc   :  { %1119 = dma.done.wait [#allocation4], 16 }
   0xd   :  { %1120 = vsyncadd [#allocation4], 4294967280 }
   0xe   :  { %18 = sfence }
   0xf   :  { %v1047_v0 = vld [vmem:[%s1362_s2 + $0x10] sm:$0xff]   ;;  %v36_v1 = vlaneseq  ;;  %v1048_v2 = vld [vmem:[%s1362_s2 + $0x18] sm:$0xff]   ;;  %v1124_v3 = vmov 0.0   ;;  %s39_s13 = sld [smem:[#allocation5]]  ;;  %s815_s14 = sld [smem:[#allocation5 + $0x1]]  ;;  %vm60_vm0 = vcmask 253952  }
  0x10   :  { %65 = vst [vmem:[#allocation3] sm:$0x1] %v1124_v3  ;;  %66 = vst [vmem:[#allocation3 + $0x18] sm:$0x1] %v1124_v3  ;;  %942 = vmatprep.subr.bf16.mxu0 %v1047_v0  ;;  %v1049_v5 = vld [vmem:[%s1362_s2] sm:$0xff]   ;;  %v1193_v8 = vld [vmem:[%s1361_s1 + $0x8] sm:$0xff] }
  0x11   :  { %67 = vst [vmem:[#allocation3 + $0x11] sm:$0x1] %v1124_v3  ;;  %68 = vst [vmem:[#allocation3 + $0x29] sm:$0x1] %v1124_v3  ;;  %v37_v4 = vshrl.u32 %v36_v1, 7  ;;  %943 = vmatpush3.bf16.msra.mxu0 %v1047_v0  ;;  %v1188_v7 = vld [vmem:[%s1361_s1] sm:$0xff] }
  0x12   :  { %944 = vmatprep.subr.bf16.mxu0 %v1048_v2  ;;  %61 = vst.msk [vmem:[#allocation2] sm:$0x1] %vm60_vm0, %v1124_v3  ;;  %62 = vst.msk [vmem:[#allocation2 + $0x18] sm:$0x1] %vm60_vm0, %v1124_v3  ;;  %v1198_v9 = vld [vmem:[%s1361_s1 + $0x10] sm:$0xff]  ;;  %v1203_v10 = vld [vmem:[%s1361_s1 + $0x18] sm:$0xff] }
  0x13   :  { %63 = vst.msk [vmem:[#allocation2 + $0x11] sm:$0x1] %vm60_vm0, %v1124_v3  ;;  %64 = vst.msk [vmem:[#allocation2 + $0x29] sm:$0x1] %vm60_vm0, %v1124_v3  ;;  %v38_v6 = vadd.s32 8, %v37_v4  ;;  %vm73_vm1 = vcmask 261120  }
  0x14   :  { %v1053_v13 = vld [vmem:[%s1364_s4] sm:$0xff]   ;;  %v1055_v18 = vld [vmem:[%s1364_s4 + $0x8] sm:$0xff]   ;;  %v1057_v23 = vld [vmem:[%s1364_s4 + $0x10] sm:$0xff]  }
  0x15   :  { %945 = vmatpush3.bf16.msra.mxu0 %v1048_v2  ;;  %v40_v11 = vstv %s39_s13  ;;  %v43_v12 = vstv %s815_s14  ;;  %986 = vmatprep.subr.bf16.mxu1 %v1053_v13  ;;  %v1050_v32 = vld [vmem:[%s1362_s2 + $0x8] sm:$0xff]   ;;  %v1051_v34 = vld [vmem:[%s1362_s2 + $0x20] sm:$0xff]  }
  0x16   :  { %950 = vmatprep.subr.bf16.mxu0 %v1049_v5  ;;  %vm44_vm2 = vcmp.lt.s32.totalorder %v37_v4, %v40_v11  ;;  %vm45_vm3 = vcmp.lt.s32.totalorder %v38_v6, %v40_v11  ;;  %vm47_vm4 = vcmp.lt.s32.totalorder %v38_v6, %v43_v12  ;;  %vm46_vm5 = vcmp.lt.s32.totalorder %v37_v4, %v43_v12 }
  0x17   :  { %v1208_v14 = vsel %vm44_vm2, 1.0, %v1124_v3  ;;  %v1210_v15 = vsel %vm45_vm3, 1.0, %v1124_v3  ;;  %v1212_v16 = vsel %vm46_vm5, 1.0, %v1124_v3  ;;  %v1214_v17 = vsel %vm47_vm4, 1.0, %v1124_v3  ;;  %987 = vmatpush3.bf16.msra.mxu1 %v1053_v13 }
  0x18   :  { %v69_v19 = vmul.f32 %v1208_v14, %v1188_v7  ;;  %v70_v20 = vmul.f32 %v1210_v15, %v1193_v8  ;;  %v71_v21 = vmul.f32 %v1212_v16, %v1198_v9  ;;  %v72_v22 = vmul.f32 %v1214_v17, %v1203_v10  ;;  %988 = vmatprep.subr.bf16.mxu1 %v1055_v18 }
  0x1a   :  { %74 = vst.msk [vmem:[#allocation2 + $0x1] sm:$0xff] %vm73_vm1, %v69_v19  ;;  %75 = vst.msk [vmem:[#allocation2 + $0x9] sm:$0xff] %vm73_vm1, %v70_v20 }
  0x1b   :  { %76 = vst.msk [vmem:[#allocation2 + $0x19] sm:$0xff] %vm73_vm1, %v71_v21  ;;  %77 = vst.msk [vmem:[#allocation2 + $0x21] sm:$0xff] %vm73_vm1, %v72_v22  ;;  %989 = vmatpush3.bf16.msra.mxu1 %v1055_v18 }
  0x1c   :  { %990 = vmatprep.subr.bf16.mxu1 %v1057_v23 }
  0x1f   :  { %991 = vmatpush3.bf16.msra.mxu1 %v1057_v23 }
  0x21   :  { %v88_v24 = vld [vmem:[#allocation2 + $0x1] sm:$0xff]  ;;  %v89_v25 = vld [vmem:[#allocation2 + $0x9] sm:$0xff] }
  0x22   :  { %v90_v26 = vld [vmem:[#allocation2 + $0x19] sm:$0xff]  ;;  %v92_v27 = vpack.c.bf16 %v89_v25, %v88_v24  ;;  %v91_v28 = vld [vmem:[#allocation2 + $0x21] sm:$0xff]  ;;  %v234_v38 = vld [vmem:[#allocation2 + $0xa] sm:$0xff] }
  0x23   :  { %v78_v29 = vld [vmem:[#allocation2] sm:$0xff]  ;;  %v79_v30 = vld [vmem:[#allocation2 + $0x8] sm:$0xff]  ;;  %v93_v31 = vpack.c.bf16 %v91_v28, %v90_v26  ;;  %v80_v35 = vld [vmem:[#allocation2 + $0x18] sm:$0xff] }
  0x24   :  { %v82_v33 = vpack.c.bf16 %v79_v30, %v78_v29  ;;  %946 = vmatprep.mubr.msk.bf16.mxu0 %vm73_vm1, %v92_v27  ;;  %v81_v36 = vld [vmem:[#allocation2 + $0x20] sm:$0xff] }
  0x25   :  { %947 = vmatmul.mubr.msk.bf16.vlgmr.msra.gmra.mrb[0].mxu0 %vm73_vm1, %v93_v31  ;;  %v233_v37 = vld [vmem:[#allocation2 + $0x2] sm:$0xff] }
  0x26   :  { %951 = vmatpush3.bf16.msra.mxu0 %v1049_v5  ;;  %954 = vmatprep.mubr.msk.bf16.mxu0 %vm73_vm1, %v82_v33 }
  0x27   :  { %952 = vmatprep.subr.bf16.mxu0 %v1050_v32 }
  0x2a   :  { %953 = vmatpush3.bf16.msra.mxu0 %v1050_v32 }
  0x2b   :  { %958 = vmatprep.subr.bf16.mxu0 %v1051_v34 }
  0x2c   :  { %19 = vsyncpa [#allocation7], 0  ;;  %v83_v39 = vpack.c.bf16 %v81_v36, %v80_v35  ;;  %v237_v40 = vpack.c.bf16 %v234_v38, %v233_v37  ;;  %v1052_v41 = vld [vmem:[%s1362_s2 + $0x28] sm:$0xff]   ;;  %v1054_v42 = vld [vmem:[%s1364_s4 + $0x40] sm:$0xff]  }
  0x2d   :  { %v235_v43 = vld [vmem:[#allocation2 + $0x1a] sm:$0xff]  ;;  %v236_v44 = vld [vmem:[#allocation2 + $0x22] sm:$0xff]  ;;  %v1058_v47 = vld [vmem:[%s1364_s4 + $0x50] sm:$0xff]  }
  0x2e   :  { %v238_v45 = vpack.c.bf16 %v236_v44, %v235_v43  ;;  %v1056_v46 = vld [vmem:[%s1364_s4 + $0x48] sm:$0xff]   ;;  %v1060_v48 = vld [vmem:[%s1364_s4 + $0x58] sm:$0xff]   ;;  %v1062_v49 = vld [vmem:[%s1364_s4 + $0x60] sm:$0xff]  }
  0x2f   :  { %v1059_v50 = vld [vmem:[%s1364_s4 + $0x18] sm:$0xff]   ;;  %v1064_v51 = vld [vmem:[%s1364_s4 + $0x68] sm:$0xff]   ;;  %v1061_v52 = vld [vmem:[%s1364_s4 + $0x20] sm:$0xff]  }
  0x30   :  { %992 = vmatprep.subr.bf16.mxu1 %v1059_v50  ;;  %v1066_v53 = vld [vmem:[%s1364_s4 + $0x70] sm:$0xff]   ;;  %v1063_v54 = vld [vmem:[%s1364_s4 + $0x28] sm:$0xff]   ;;  %v1068_v55 = vld [vmem:[%s1364_s4 + $0x78] sm:$0xff]  }
  0x31   :  { %955 = vmatmul.mubr.msk.bf16.vlgmr.msra.gmra.mrb[0].mxu0 %vm73_vm1, %v83_v39  ;;  %993 = vmatpush3.bf16.msra.mxu1 %v1059_v50  ;;  %v1065_v56 = vld [vmem:[%s1364_s4 + $0x30] sm:$0xff]   ;;  %v1067_v57 = vld [vmem:[%s1364_s4 + $0x38] sm:$0xff]   ;;  %v1069_v58 = vld [vmem:[%s1364_s4 + $0x80] sm:$0xff]  }
  0x32   :  { %959 = vmatpush3.bf16.msra.mxu0 %v1051_v34  ;;  %962 = vmatprep.mubr.msk.bf16.mxu0 %vm73_vm1, %v237_v40  ;;  %v840_v59 = vld [vmem:[%s1363_s3] ss:$0 sm:$0xff]  ;;  %v1070_v30 = vld [vmem:[%s1364_s4 + $0x88] sm:$0xff]   ;;  %v1071_v32 = vld [vmem:[%s1364_s4 + $0x90] sm:$0xff]  }
  0x33   :  { %960 = vmatprep.subr.bf16.mxu0 %v1052_v41  ;;  %994 = vmatprep.subr.bf16.mxu1 %v1061_v52  ;;  %v1072_v33 = vld [vmem:[%s1364_s4 + $0x98] sm:$0xff]   ;;  %v1073_v34 = vld [vmem:[%s1364_s4 + $0xa0] sm:$0xff]   ;;  %v1074_v35 = vld [vmem:[%s1364_s4 + $0xa8] sm:$0xff]  }
  0x34   :  { %v1075_v36 = vld [vmem:[%s1364_s4 + $0xb0] sm:$0xff]   ;;  %v1076_v37 = vld [vmem:[%s1364_s4 + $0xb8] sm:$0xff]  }
  0x35   :  { %995 = vmatpush3.bf16.msra.mxu1 %v1061_v52 }
  0x36   :  { %961 = vmatpush3.bf16.msra.mxu0 %v1052_v41  ;;  %996 = vmatprep.subr.bf16.mxu1 %v1063_v54 }
  0x37   :  { %966 = vmatprep.subr.bf16.mxu0 %v1054_v42 }
  0x39   :  { %997 = vmatpush3.bf16.msra.mxu1 %v1063_v54 }
  0x3a   :  { %998 = vmatprep.subr.bf16.mxu1 %v1065_v56 }
  0x3d   :  { %963 = vmatmul.mubr.msk.bf16.vlgmr.msra.gmra.mrb[0].mxu0 %vm73_vm1, %v238_v45  ;;  %999 = vmatpush3.bf16.msra.mxu1 %v1065_v56 }
  0x3e   :  { %967 = vmatpush3.bf16.msra.mxu0 %v1054_v42  ;;  %1000 = vmatprep.subr.bf16.mxu1 %v1067_v57 }
  0x3f   :  { %968 = vmatprep.subr.bf16.mxu0 %v1056_v46 }
  0x41   :  { %1001 = vmatpush3.bf16.msra.mxu1 %v1067_v57 }
  0x42   :  { %969 = vmatpush3.bf16.msra.mxu0 %v1056_v46  ;;  %1006 = vmatprep.subr.bf16.mxu1 %v1069_v58  ;;  %v897_v46 = vld [vmem:[%s1365_s5] ss:$0 sm:$0xff] }
  0x43   :  { %970 = vmatprep.subr.bf16.mxu0 %v1058_v47 }
  0x46   :  { %971 = vmatpush3.bf16.msra.mxu0 %v1058_v47 }
  0x47   :  { %972 = vmatprep.subr.bf16.mxu0 %v1060_v48 }
  0x4a   :  { %973 = vmatpush3.bf16.msra.mxu0 %v1060_v48 }
  0x4b   :  { %974 = vmatprep.subr.bf16.mxu0 %v1062_v49 }
  0x4e   :  { %975 = vmatpush3.bf16.msra.mxu0 %v1062_v49 }
  0x4f   :  { %976 = vmatprep.subr.bf16.mxu0 %v1064_v51 }
  0x52   :  { %977 = vmatpush3.bf16.msra.mxu0 %v1064_v51 }
  0x53   :  { %978 = vmatprep.subr.bf16.mxu0 %v1066_v53 }
  0x56   :  { %979 = vmatpush3.bf16.msra.mxu0 %v1066_v53 }
  0x57   :  { %980 = vmatprep.subr.bf16.mxu0 %v1068_v55 }
  0x5a   :  { %981 = vmatpush3.bf16.msra.mxu0 %v1068_v55 }
 0x110   :  { %v964_v60 = vpop.f32.mrb[0].mxu0 }
 0x111   :  { %v324_v61 = vadd.f32 %v964_v60, %v840_v59  ;;  %v296_v62 = vpop.f32.mrb[1].mxu0 }
 0x112   :  { %v322_v63 = vadd.f32 %v840_v59, %v296_v62  ;;  %v965_v0 = vpop.f32.mrb[2].mxu0 }
 0x113   :  { %v328_v1 = vmax.f32 %v324_v61, 0.0  ;;  %v325_v2 = vadd.f32 %v965_v0, %v840_v59  ;;  %v299_v3 = vpop.f32.mrb[3].mxu0 }
 0x114   :  { %v326_v4 = vmax.f32 %v322_v63, 0.0  ;;  %v323_v5 = vadd.f32 %v840_v59, %v299_v3 }
 0x115   :  { %v332_v6 = vmul.f32 %v1212_v16, %v328_v1  ;;  %v329_v11 = vmax.f32 %v325_v2, 0.0 }
 0x116   :  { %v330_v12 = vmul.f32 %v1208_v14, %v326_v4  ;;  %v327_v13 = vmax.f32 %v323_v5, 0.0 }
 0x117   :  { %336 = vst [vmem:[#allocation3 + $0x19] sm:$0xff] %v332_v6  ;;  %v333_v18 = vmul.f32 %v1214_v17, %v329_v11 }
 0x118   :  { %334 = vst [vmem:[#allocation3 + $0x1] sm:$0xff] %v330_v12  ;;  %v331_v19 = vmul.f32 %v1210_v15, %v327_v13 }
 0x119   :  { %337 = vst [vmem:[#allocation3 + $0x21] sm:$0xff] %v333_v18  ;;  %v365_v20 = vpack.c.bf16 %v333_v18, %v332_v6 }
 0x11a   :  { %335 = vst [vmem:[#allocation3 + $0x9] sm:$0xff] %v331_v19  ;;  %v364_v21 = vpack.c.bf16 %v331_v19, %v330_v12 }
 0x11c   :  { %982 = vmatprep.mubr.bf16.mxu0 %v364_v21 }
 0x11d   :  { %983 = vmatmul.mubr.bf16.vlgmr.msra.gmra.mrb[4].mxu0 %v365_v20 }
 0x11e   :  { %v340_v28 = vld [vmem:[#allocation3 + $0x18] sm:$0xff] }
 0x11f   :  { %v338_v22 = vld [vmem:[#allocation3] sm:$0xff] }
 0x120   :  { %v341_v23 = vld [vmem:[#allocation3 + $0x20] sm:$0xff] }
 0x121   :  { %v339_v24 = vld [vmem:[#allocation3 + $0x8] sm:$0xff]  ;;  %v343_v29 = vpack.c.bf16 %v341_v23, %v340_v28  ;;  %v579_v38 = vld [vmem:[#allocation3 + $0x1a] sm:$0xff] }
 0x122   :  { %v577_v25 = vld [vmem:[#allocation3 + $0x2] sm:$0xff]  ;;  %v578_v26 = vld [vmem:[#allocation3 + $0xa] sm:$0xff]  ;;  %v342_v27 = vpack.c.bf16 %v339_v24, %v338_v22 }
 0x123   :  { %v581_v31 = vpack.c.bf16 %v578_v26, %v577_v25  ;;  %v580_v39 = vld [vmem:[#allocation3 + $0x22] sm:$0xff] }
 0x124   :  { %1002 = vmatprep.mubr.bf16.mxu1 %v342_v27  ;;  %v582_v40 = vpack.c.bf16 %v580_v39, %v579_v38  ;;  %v898_v39 = vld [vmem:[%s1366_s6] ss:$0 sm:$0xff]  ;;  %s1125_s6 = smov [#allocation6]  }
 0x125   :  { %1003 = vmatmul.mubr.bf16.vlgmr.msra.gmra.mrb[0].mxu1 %v343_v29 }
 0x126   :  { %1007 = vmatpush3.bf16.msra.mxu1 %v1069_v58  ;;  %1022 = vmatprep.mubr.bf16.mxu1 %v581_v31 }
 0x127   :  { %1008 = vmatprep.subr.bf16.mxu1 %v1070_v30 }
 0x12a   :  { %1009 = vmatpush3.bf16.msra.mxu1 %v1070_v30 }
 0x12b   :  { %1010 = vmatprep.subr.bf16.mxu1 %v1071_v32 }
 0x12e   :  { %1011 = vmatpush3.bf16.msra.mxu1 %v1071_v32 }
 0x12f   :  { %1012 = vmatprep.subr.bf16.mxu1 %v1072_v33 }
 0x132   :  { %1013 = vmatpush3.bf16.msra.mxu1 %v1072_v33 }
 0x133   :  { %1014 = vmatprep.subr.bf16.mxu1 %v1073_v34 }
 0x136   :  { %1015 = vmatpush3.bf16.msra.mxu1 %v1073_v34 }
 0x137   :  { %1016 = vmatprep.subr.bf16.mxu1 %v1074_v35 }
 0x13a   :  { %1017 = vmatpush3.bf16.msra.mxu1 %v1074_v35 }
 0x13b   :  { %1018 = vmatprep.subr.bf16.mxu1 %v1075_v36 }
 0x13e   :  { %1019 = vmatpush3.bf16.msra.mxu1 %v1075_v36 }
 0x13f   :  { %1020 = vmatprep.subr.bf16.mxu1 %v1076_v37 }
 0x142   :  { %1021 = vmatpush3.bf16.msra.mxu1 %v1076_v37 }
 0x145   :  { %1023 = vmatmul.mubr.bf16.vlgmr.msra.gmra.mrb[0].mxu1 %v582_v40 }
 0x1f0   :  { %v984_v41 = vpop.f32.mrb[4].mxu0 }
 0x1f1   :  { %v465_v42 = vpop.f32.mrb[5].mxu0 }
 0x1f2   :  { %v985_v43 = vpop.f32.mrb[6].mxu0 }
 0x1f3   :  { %v468_v44 = vpop.f32.mrb[7].mxu0 }
 0x218   :  { %v1024_v45 = vpop.f32.mrb[0].mxu1 }
 0x219   :  { %v1026_v47 = vadd.f32 %v1024_v45, %v984_v41  ;;  %v682_v48 = vpop.f32.mrb[1].mxu1  ;;  %v899_v41 = vld [vmem:[%s1367_s7] ss:$0 sm:$0xff]  ;;  %s804_s7 = sshll.u32 %s1125_s6, 4  ;;  %s805_s7 = int_to_ptr.vmem [resolvable:$true] %s804_s7 }
 0x21a   :  { %v1027_v49 = vadd.f32 %v682_v48, %v465_v42  ;;  %v1025_v50 = vpop.f32.mrb[2].mxu1  ;;  %s1097_s11 = scalar_lea.vmem %s805_s7, 512  ;;  %p1102_p6 = scmp.lt.s32.totalorder %s805_s7, %s805_s7 }
 0x21b   :  { %v710_v51 = vadd.f32 %v1026_v47, %v897_v46  ;;  %v1028_v52 = vadd.f32 %v1025_v50, %v985_v43  ;;  %v685_v53 = vpop.f32.mrb[3].mxu1  ;;  %p1098_p5 = scmp.ne.s32.totalorder %s805_s7, %s1097_s11  ;;  %p1103_p7 = scmp.lt.s32.totalorder %s1097_s11, %s1097_s11 }
 0x21c   :  { %v708_v54 = vadd.f32 %v1027_v49, %v897_v46  ;;  %v1029_v55 = vadd.f32 %v685_v53, %v468_v44 }
 0x21d   :  { %v711_v56 = vadd.f32 %v1028_v52, %v897_v46  ;;  %v714_v57 = vadd.f32 %v710_v51, %v1198_v9  ;;  %p1104_p8 = por %p1103_p7, %p1102_p6 }
 0x21e   :  { %v709_v58 = vadd.f32 %v1029_v55, %v897_v46  ;;  %v712_v59 = vadd.f32 %v708_v54, %v1188_v7 }
 0x21f   :  { %v722_v60 = vsel %vm73_vm1, %v714_v57, 0.0  ;;  %v715_v61 = vadd.f32 %v711_v56, %v1203_v10  ;;  %p1105_p9 = pnand %p1104_p8, %p1098_p5 }
 0x220   :  { %723 = vadd.xlane.f32.xlu1 %v722_v60  ;;  %v716_v62 = vsel %vm73_vm1, %v712_v59, 0.0  ;;  %v713_v63 = vadd.f32 %v709_v58, %v1193_v8 }
 0x221   :  { %717 = vadd.xlane.f32.xlu0 %v716_v62  ;;  %v725_v0 = vsel %vm73_vm1, %v715_v61, 0.0 }
 0x222   :  { %v719_v1 = vsel %vm73_vm1, %v713_v63, 0.0 }
 0x224   :  { %726 = vadd.xlane.f32.xlu1 %v725_v0 }
 0x225   :  { %720 = vadd.xlane.f32.xlu0 %v719_v1 }
 0x2ad   :  { %v724_v9 = vpop.xlane.xlu1 %723 }
 0x2ae   :  { %v731_v2 = vmul.f32 0.03125, %v724_v9  ;;  %v718_v3 = vpop.xlane.xlu0 %717 }
 0x2af   :  { %v729_v7 = vmul.f32 0.03125, %v718_v3 }
 0x2b0   :  { %v735_v4 = vsub.f32 %v714_v57, %v731_v2 }
 0x2b1   :  { %v733_v5 = vsub.f32 %v712_v59, %v729_v7  ;;  %v727_v6 = vpop.xlane.xlu1 %726 }
 0x2b2   :  { %v732_v10 = vmul.f32 0.03125, %v727_v6  ;;  %v721_v11 = vpop.xlane.xlu0 %720  ;;  %v739_v20 = vmul.f32 %v735_v4, %v735_v4 }
 0x2b3   :  { %v730_v12 = vmul.f32 0.03125, %v721_v11  ;;  %v737_v13 = vmul.f32 %v733_v5, %v733_v5 }
 0x2b4   :  { %v736_v18 = vsub.f32 %v715_v61, %v732_v10  ;;  %v747_v22 = vsel %vm73_vm1, %v739_v20, 0.0 }
 0x2b5   :  { %v734_v8 = vsub.f32 %v713_v63, %v730_v12  ;;  %v741_v19 = vsel %vm73_vm1, %v737_v13, 0.0 }
 0x2b6   :  { %742 = vadd.xlane.f32.xlu0 %v741_v19  ;;  %v740_v24 = vmul.f32 %v736_v18, %v736_v18 }
 0x2b7   :  { %v738_v21 = vmul.f32 %v734_v8, %v734_v8 }
 0x2b8   :  { %v750_v25 = vsel %vm73_vm1, %v740_v24, 0.0 }
 0x2b9   :  { %v744_v23 = vsel %vm73_vm1, %v738_v21, 0.0 }
 0x2ba   :  { %748 = vadd.xlane.f32.xlu0 %v747_v22  ;;  %745 = vadd.xlane.f32.xlu1 %v744_v23 }
 0x2be   :  { %751 = vadd.xlane.f32.xlu1 %v750_v25 }
 0x343   :  { %v743_v26 = vpop.xlane.xlu0 %742 }
 0x344   :  { %v753_v27 = vmul.f32 0.03125, %v743_v26 }
 0x346   :  { %v757_v28 = vadd.f32 1e-05, %v753_v27 }
 0x347   :  { %v746_v29 = vpop.xlane.xlu1 %745  ;;  %v749_v30 = vpop.xlane.xlu0 %748 }
 0x348   :  { %1077 = vrsqrt.f32 %v757_v28  ;;  %v754_v31 = vmul.f32 0.03125, %v746_v29  ;;  %v755_v32 = vmul.f32 0.03125, %v749_v30 }
 0x34a   :  { %v758_v33 = vadd.f32 1e-05, %v754_v31  ;;  %v759_v34 = vadd.f32 1e-05, %v755_v32 }
 0x34b   :  { %v752_v35 = vpop.xlane.xlu1 %751 }
 0x34c   :  { %1079 = vrsqrt.f32 %v758_v33  ;;  %v756_v36 = vmul.f32 0.03125, %v752_v35 }
 0x34d   :  { %1081 = vrsqrt.f32 %v759_v34 }
 0x34e   :  { %v760_v37 = vadd.f32 1e-05, %v756_v36 }
 0x350   :  { %1083 = vrsqrt.f32 %v760_v37 }
 0x352   :  { %v1078_v38 = vpop.eup %1077 }
 0x353   :  { %v765_v40 = vmul.f32 %v1078_v38, %v733_v5 }
 0x355   :  { %v776_v42 = vmul.f32 %v898_v39, %v765_v40 }
 0x356   :  { %v1080_v43 = vpop.eup %1079 }
 0x357   :  { %v1082_v44 = vpop.eup %1081  ;;  %v787_v45 = vadd.f32 %v899_v41, %v776_v42  ;;  %v766_v46 = vmul.f32 %v1080_v43, %v734_v8 }
 0x358   :  { %v767_v47 = vmul.f32 %v1082_v44, %v735_v4 }
 0x359   :  { %v777_v48 = vmul.f32 %v898_v39, %v766_v46  ;;  %v791_v49 = vmul.f32 %v1208_v14, %v787_v45 }
 0x35a   :  { %v1084_v50 = vpop.eup %1083  ;;  %v778_v51 = vmul.f32 %v898_v39, %v767_v47 }
 0x35b   :  { %v788_v52 = vadd.f32 %v899_v41, %v777_v48  ;;  %v768_v53 = vmul.f32 %v1084_v50, %v736_v18  ;;  %795 = vst.msk [vmem:[#allocation6] sm:$0xff] %vm73_vm1, %v791_v49 }
 0x35c   :  { %v789_v54 = vadd.f32 %v899_v41, %v778_v51 }
 0x35d   :  { %v779_v55 = vmul.f32 %v898_v39, %v768_v53  ;;  %v792_v56 = vmul.f32 %v1210_v15, %v788_v52 }
 0x35e   :  { %v793_v57 = vmul.f32 %v1212_v16, %v789_v54 }
 0x35f   :  { %v790_v58 = vadd.f32 %v899_v41, %v779_v55  ;;  %796 = vst.msk [vmem:[#allocation6 + $0x8] sm:$0xff] %vm73_vm1, %v792_v56 }
 0x360   :  { %797 = vst.msk [vmem:[#allocation6 + $0x10] sm:$0xff] %vm73_vm1, %v793_v57 }
 0x361   :  { %v794_v14 = vmul.f32 %v1214_v17, %v790_v58 }
 0x363   :  { %798 = vst.msk [vmem:[#allocation6 + $0x18] sm:$0xff] %vm73_vm1, %v794_v14 }
 0x364   :  { %1108 = shalt.err (!%p1105_p9)
}
 0x365   :  { %s1109_s13 = scalar_lea.hbm %s1368_s8, 512 }
 0x366   :  { %p1110_p10 = scmp.ne.s32.totalorder %s1368_s8, %s1109_s13  ;;  %p1113_p11 = scmp.lt.u32.totalorder %s1109_s13, %s1368_s8 }
 0x368   :  { %p1115_p12 = pnand %p1113_p11, %p1110_p10 }
 0x36a   :  { %1118 = shalt.err (!%p1115_p12)
}
 0x36b   :  { %s1126_s3 = smov 128   ;;  %s1127_s17 = smov 8  }
 0x36c   :  { %810 = dma.vmem_to_hbm [thread:$0]  %s805_s7, 512, %s1368_s8, [#allocation7], %s1126_s3, %s1126_s3, %s1127_s17  }
 0x36d   :  { %1121 = dma.done.wait [#allocation7], 512  }
 0x36e   :  { %1122 = vsyncadd [#allocation7], 4294966784 }
 0x36f   :  { %814 = vsyncpa [#allocation7], 1 }

</bundles_post_ra>
